<compile_context>
chip_gen: v7x
topology: tpu7x:2x2x1
jax: 0.10.0
libtpu: 0.0.40
codegen_flags: <defaults>
</compile_context>

<pallas_src>
import jax
import jax.numpy as jnp
from jax.experimental import pallas as pl
from jax.experimental.pallas import tpu as pltpu


def autorec_kernel(x_ref, w1_ref, b1_ref, w2_ref, b2_ref, o_ref, h_ref):
    # Grid: (batch_tile_idx i, item_tile_idx n)
    # x_ref:  (bt, num_items)  bf16
    # w1_ref: (num_items, H)   bf16 (resident)     b1_ref: (1, H)  f32
    # w2_ref: (H, tn)          bf16 (streamed)     b2_ref: (1, tn) f32
    # o_ref:  (bt, tn)         f32
    # h_ref:  (bt, H)          f32 VMEM scratch (persists across the n axis)
    n = pl.program_id(1)

    # Encoder: run once per batch tile (first item tile), cache h in VMEM.
    @pl.when(n == 0)
    def _():
        h = jnp.dot(x_ref[...], w1_ref[...],
                    preferred_element_type=jnp.float32) + b1_ref[...]
        h_ref[...] = jax.nn.sigmoid(h)

    # Decoder: matmul against the streamed (H, tn) slice of W2^T.
    y = jnp.dot(h_ref[...].astype(w2_ref.dtype), w2_ref[...],
                preferred_element_type=jnp.float32) + b2_ref[...]
    o_ref[...] = y.astype(o_ref.dtype)


def _round_up(a: int, m: int) -> int:
    return (a + m - 1) // m * m


def autorec_forward(x, w1_t, b1, w2_t, b2, *, batch_tile=128, item_tile=256):
    """x: (B, num_items); w1_t: (num_items, H); b1: (1, H);
       w2_t: (H, num_items); b2: (1, num_items) -> (B, num_items) f32."""
    B, num_items = x.shape
    H = w1_t.shape[1]

    # bf16 on the MXU, f32 accumulation. Biases / output stay f32.
    x_bf = x.astype(jnp.bfloat16)
    w1_bf = w1_t.astype(jnp.bfloat16)
    w2_bf = w2_t.astype(jnp.bfloat16)
    b1_f = b1.astype(jnp.float32)
    b2_f = b2.astype(jnp.float32)

    # Batch tile: as large as possible up to `batch_tile`, multiple of 16
    # (bf16 sublane packing). Pad ragged batches with zero rows.
    bt = min(batch_tile, _round_up(B, 16))
    B_pad = _round_up(B, bt)
    if B_pad != B:
        x_bf = jnp.pad(x_bf, ((0, B_pad - B), (0, 0)))

    # Decoder-output tile over num_items (lane-dense, multiple of 128).
    if num_items % item_tile == 0 and item_tile % 128 == 0:
        tn = item_tile
    else:
        tn = num_items  # fall back to a single full-width tile

    grid = (B_pad // bt, num_items // tn)

    flops = 4 * B_pad * num_items * H          # two matmuls (2*M*N*K each)
    transcendentals = B_pad * H                # sigmoid
    bytes_accessed = (x_bf.size * 2 + w1_bf.size * 2 + w2_bf.size * 2
                      + b1_f.size * 4 + b2_f.size * 4 + B_pad * num_items * 4)

    out = pl.pallas_call(
        autorec_kernel,
        out_shape=jax.ShapeDtypeStruct((B_pad, num_items), jnp.float32),
        grid_spec=pltpu.PrefetchScalarGridSpec(
            num_scalar_prefetch=0,
            grid=grid,
            in_specs=[
                # x tile: block index constant along n -> fetched once per i.
                pl.BlockSpec((bt, num_items), lambda i, n: (i, 0)),
                # Resident encoder weight/bias: constant block -> single buffer.
                pl.BlockSpec((num_items, H), lambda i, n: (0, 0),
                             pipeline_mode=pl.Buffered(1)),
                pl.BlockSpec((1, H), lambda i, n: (0, 0),
                             pipeline_mode=pl.Buffered(1)),
                # Decoder weight/bias streamed over the item (output-N) axis.
                pl.BlockSpec((H, tn), lambda i, n: (0, n)),
                pl.BlockSpec((1, tn), lambda i, n: (0, n)),
            ],
            out_specs=pl.BlockSpec((bt, tn), lambda i, n: (i, n)),
            scratch_shapes=[pltpu.VMEM((bt, H), jnp.float32)],
        ),
        compiler_params=pltpu.CompilerParams(
            dimension_semantics=("parallel", "arbitrary"),
            vmem_limit_bytes=48 * 1024 * 1024,
        ),
        cost_estimate=pl.CostEstimate(
            flops=flops,
            transcendentals=transcendentals,
            bytes_accessed=bytes_accessed),
    )(x_bf, w1_bf, b1_f, w2_bf, b2_f)

    return out[:B] if B_pad != B else out


def reference_forward(x, w1_t, b1, w2_t, b2):
    h = jax.nn.sigmoid(x @ w1_t + b1)
    return h @ w2_t + b2


if __name__ == "__main__":
    # Small deterministic problem. num_users chosen non-aligned to exercise the
    # ragged-batch padding path; hidden padded to 128 per the MXU/lane advice.
    num_users = 200
    num_items = 512
    num_hidden = 128

    key = jax.random.PRNGKey(0)
    k_x, k_w1, k_b1, k_w2, k_b2 = jax.random.split(key, 5)

    x = jax.random.normal(k_x, (num_users, num_items), dtype=jnp.float32)

    # nn.Linear(num_items, hidden): weight (hidden, num_items) stored
    # pre-transposed as (num_items, hidden); bias (1, hidden).
    w1_t = jax.random.normal(k_w1, (num_items, num_hidden), dtype=jnp.float32) * 0.05
    b1 = jax.random.normal(k_b1, (1, num_hidden), dtype=jnp.float32) * 0.05
    # nn.Linear(hidden, num_items): weight stored pre-transposed as
    # (hidden, num_items); bias (1, num_items).
    w2_t = jax.random.normal(k_w2, (num_hidden, num_items), dtype=jnp.float32) * 0.05
    b2 = jax.random.normal(k_b2, (1, num_items), dtype=jnp.float32) * 0.05

    out = autorec_forward(x, w1_t, b1, w2_t, b2)
    out = jax.block_until_ready(out)

    ref = reference_forward(x, w1_t, b1, w2_t, b2)
    assert out.shape == (num_users, num_items)
    # Tolerance loosened for bf16 matmul inputs (f32 accumulation).
    assert jnp.allclose(out, ref, atol=2e-2, rtol=2e-2)

    print("KERNEL_OK")
</pallas_src>

<mosaic_0001>
module attributes {stable_mosaic.version = 11 : i64} {
  func.func @autorec_kernel(%arg0: i32, %arg1: i32, %arg2: memref<128x512xbf16, #tpu.memory_space<vmem>>, %arg3: memref<512x128xbf16, #tpu.memory_space<vmem>>, %arg4: memref<1x128xf32, #tpu.memory_space<vmem>>, %arg5: memref<128x256xbf16, #tpu.memory_space<vmem>>, %arg6: memref<1x256xf32, #tpu.memory_space<vmem>>, %arg7: memref<128x256xf32, #tpu.memory_space<vmem>>, %arg8: memref<128x128xf32, #tpu.memory_space<vmem>>) attributes {dimension_semantics = [#tpu.dimension_semantics<parallel>, #tpu.dimension_semantics<arbitrary>], iteration_bounds = array<i64: 2, 2>, scalar_prefetch = 0 : i64, scratch_operands = 1 : i64, tpu.core_type = #tpu.core_type<tc>, window_params = [{transform_indices = @transform_0, window_bounds = array<i64: 128, 512>}, {pipeline_mode = #tpu.pipeline_mode<synchronous>, transform_indices = @transform_1, window_bounds = array<i64: 512, 128>}, {pipeline_mode = #tpu.pipeline_mode<synchronous>, transform_indices = @transform_2, window_bounds = array<i64: 1, 128>}, {transform_indices = @transform_3, window_bounds = array<i64: 128, 256>}, {transform_indices = @transform_4, window_bounds = array<i64: 1, 256>}, {transform_indices = @transform_5, window_bounds = array<i64: 128, 256>}]} {
    %c0_i32 = arith.constant 0 : i32
    %0 = arith.cmpi eq, %arg1, %c0_i32 : i32
    %1 = arith.extui %0 : i1 to i32
    %c0_i32_0 = arith.constant 0 : i32
    %2 = arith.cmpi ne, %1, %c0_i32_0 : i32
    scf.if %2 {
      %c0_8 = arith.constant 0 : index
      %c0_9 = arith.constant 0 : index
      %11 = vector.load %arg2[%c0_8, %c0_9] : memref<128x512xbf16, #tpu.memory_space<vmem>>, vector<128x512xbf16>
      %c0_10 = arith.constant 0 : index
      %c0_11 = arith.constant 0 : index
      %12 = vector.load %arg3[%c0_10, %c0_11] : memref<512x128xbf16, #tpu.memory_space<vmem>>, vector<512x128xbf16>
      %cst_12 = arith.constant dense<0.000000e+00> : vector<128x128xf32>
      %13 = tpu.matmul %11, %12, %cst_12 {dimension_numbers = #tpu.dot_dimension_numbers<[1], [0], [0], [1], [0, 0, 1, 1], [], []>} : vector<128x512xbf16>, vector<512x128xbf16>, vector<128x128xf32> -> vector<128x128xf32>
      %c0_13 = arith.constant 0 : index
      %c0_14 = arith.constant 0 : index
      %14 = vector.load %arg4[%c0_13, %c0_14] : memref<1x128xf32, #tpu.memory_space<vmem>>, vector<1x128xf32>
      %15 = vector.broadcast %14 : vector<1x128xf32> to vector<128x128xf32>
      %16 = arith.addf %13, %15 : vector<128x128xf32>
      %17 = arith.negf %16 : vector<128x128xf32>
      %18 = math.exp %17 : vector<128x128xf32>
      %cst_15 = arith.constant 1.000000e+00 : f32
      %19 = vector.broadcast %cst_15 : f32 to vector<128x128xf32>
      %20 = arith.addf %19, %18 : vector<128x128xf32>
      %21 = arith.divf %19, %20 : vector<128x128xf32>
      %c0_16 = arith.constant 0 : index
      %c0_17 = arith.constant 0 : index
      %22 = vector.load %arg8[%c0_16, %c0_17] : memref<128x128xf32, #tpu.memory_space<vmem>>, vector<128x128xf32>
      tpu.vector_store %arg8[%c0_16, %c0_17], %21 {strides = array<i32>} : memref<128x128xf32, #tpu.memory_space<vmem>>, vector<128x128xf32>,
    } else {
    }
    %c0 = arith.constant 0 : index
    %c0_1 = arith.constant 0 : index
    %3 = vector.load %arg8[%c0, %c0_1] : memref<128x128xf32, #tpu.memory_space<vmem>>, vector<128x128xf32>
    %4 = arith.truncf %3 : vector<128x128xf32> to vector<128x128xbf16>
    %c0_2 = arith.constant 0 : index
    %c0_3 = arith.constant 0 : index
    %5 = vector.load %arg5[%c0_2, %c0_3] : memref<128x256xbf16, #tpu.memory_space<vmem>>, vector<128x256xbf16>
    %cst = arith.constant dense<0.000000e+00> : vector<128x256xf32>
    %6 = tpu.matmul %4, %5, %cst {dimension_numbers = #tpu.dot_dimension_numbers<[1], [0], [0], [1], [0, 0, 1, 1], [], []>} : vector<128x128xbf16>, vector<128x256xbf16>, vector<128x256xf32> -> vector<128x256xf32>
    %c0_4 = arith.constant 0 : index
    %c0_5 = arith.constant 0 : index
    %7 = vector.load %arg6[%c0_4, %c0_5] : memref<1x256xf32, #tpu.memory_space<vmem>>, vector<1x256xf32>
    %8 = vector.broadcast %7 : vector<1x256xf32> to vector<128x256xf32>
    %9 = arith.addf %6, %8 : vector<128x256xf32>
    %c0_6 = arith.constant 0 : index
    %c0_7 = arith.constant 0 : index
    %10 = vector.load %arg7[%c0_6, %c0_7] : memref<128x256xf32, #tpu.memory_space<vmem>>, vector<128x256xf32>
    tpu.vector_store %arg7[%c0_6, %c0_7], %9 {strides = array<i32>} : memref<128x256xf32, #tpu.memory_space<vmem>>, vector<128x256xf32>,
    return
  }
  func.func @transform_0(%arg0: i32, %arg1: i32) -> (i32, i32) {
    %c0_i32 = arith.constant 0 : i32
    %c0_i32_0 = arith.constant 0 : i32
    return %arg0, %c0_i32 : i32, i32
  }
  func.func @transform_1(%arg0: i32, %arg1: i32) -> (i32, i32) {
    %c0_i32 = arith.constant 0 : i32
    %c0_i32_0 = arith.constant 0 : i32
    %c0_i32_1 = arith.constant 0 : i32
    return %c0_i32, %c0_i32_0 : i32, i32
  }
  func.func @transform_2(%arg0: i32, %arg1: i32) -> (i32, i32) {
    %c0_i32 = arith.constant 0 : i32
    %c0_i32_0 = arith.constant 0 : i32
    %c0_i32_1 = arith.constant 0 : i32
    return %c0_i32, %c0_i32_0 : i32, i32
  }
  func.func @transform_3(%arg0: i32, %arg1: i32) -> (i32, i32) {
    %c0_i32 = arith.constant 0 : i32
    %c0_i32_0 = arith.constant 0 : i32
    return %c0_i32, %arg1 : i32, i32
  }
  func.func @transform_4(%arg0: i32, %arg1: i32) -> (i32, i32) {
    %c0_i32 = arith.constant 0 : i32
    %c0_i32_0 = arith.constant 0 : i32
    return %c0_i32, %arg1 : i32, i32
  }
  func.func @transform_5(%arg0: i32, %arg1: i32) -> (i32, i32) {
    %c0_i32 = arith.constant 0 : i32
    return %arg0, %arg1 : i32, i32
  }
}

</mosaic_0001>

<bundles_post_ra>
// kernel: tpu_custom_call.1
= control target key start
LH: loop header
LB: loop body
LE: loop exit
PB: predicated region body
PF: predicated region fallthrough
CT: control target
= control target key end

     0   :  { %s2954_s0 = inlined_call_operand.hbm [shape: bf16[256,512], index: 0, kind: input, shape index: {}]   ;;  %s2955_s1 = inlined_call_operand.hbm [shape: bf16[512,128], index: 1, kind: input, shape index: {}]   ;;  %s2956_s2 = inlined_call_operand.vmem [shape: f32[1,128], index: 2, kind: input, shape index: {}]   ;;  %s2957_s3 = inlined_call_operand.hbm [shape: bf16[128,512], index: 3, kind: input, shape index: {}]   ;;  %s2958_s4 = inlined_call_operand.vmem [shape: f32[1,512], index: 4, kind: input, shape index: {}]   ;;  %s2959_s5 = inlined_call_operand.hbm [shape: f32[256,512], index: 5, kind: output, shape index: {}]  }
   0x1   :  { %2978 = sst [smem:[#allocation25_spill]] %s2954_s0 }
   0x2   :  { %2979 = sst [smem:[#allocation26_spill]] %s2956_s2 }
   0x3   :  { %2980 = sst [smem:[#allocation27_spill]] %s2957_s3 }
   0x4   :  { %2981 = sst [smem:[#allocation28_spill]] %s2958_s4 }
   0x5   :  { %2982 = sst [smem:[#allocation29_spill]] %s2959_s5 }
   0x6   :  { %10 = vsyncpa [#allocation4], 0 }
   0x7   :  { %12 = vsyncpa [#allocation4 + $0x1], 0 }
   0x8   :  { %13 = vsyncpa [#allocation7], 0 }
   0x9   :  { %14 = vsyncpa [#allocation5], 0 }
   0xa   :  { %16 = vsyncpa [#allocation5 + $0x1], 0  ;;  %s2398_s18 = smov 0   ;;  %s2400_s19 = smov 0  }
   0xb   :  { %s2402_s20 = smov 0   ;;  %s2404_s21 = smov 0  }
   0xc   :  { %s2406_s22 = smov 0   ;;  %s2408_s23 = smov 0  }
   0xd   :  { %s2410_s24 = smov 0   ;;  %s2412_s25 = smov 0  }
   0xe   :  { %s2414_s26 = smov 0   ;;  %s2416_s27 = smov 0  }
   0xf   :  { %s2418_s28 = smov 0   ;;  %s2420_s29 = smov 0  }
  0x10   :  { %s2422_s30 = smov 0   ;;  %s2424_s6 = smov 0  }
  0x11 LB: > { %2983 = sst [smem:[#allocation14_spill]] %s2320_s23  ;;  %s31_s7 = sadd.s32 1, %s2344_s29  ;;  %s2352_s6 = sphi %s2424_s6, %s22_s6   ;;  %s2348_s30 = sphi %s2422_s30, %s3033_s30   ;;  %s2344_s29 = sphi %s2420_s29, %s3032_s29   ;;  %s2340_s28 = sphi %s2418_s28, %s3031_s28   ;;  %s2336_s27 = sphi %s2416_s27, %s3030_s27   ;;  %s2332_s26 = sphi %s2414_s26, %s3029_s26   ;;  %s2328_s25 = sphi %s2412_s25, %s3040_s25   ;;  %s2324_s24 = sphi %s2410_s24, %s3039_s24   ;;  %s2320_s23 = sphi %s2408_s23, %s3027_s23   ;;  %s2316_s22 = sphi %s2406_s22, %s3038_s22   ;;  %s2312_s21 = sphi %s2404_s21, %s3037_s21   ;;  %s2308_s20 = sphi %s2402_s20, %s3036_s20   ;;  %s2304_s19 = sphi %s2400_s19, %s3035_s19   ;;  %s2300_s18 = sphi %s2398_s18, %s3034_s18  }
  0x12   : > { %2984 = sst [smem:[#allocation15_spill]] %s2332_s26  ;;  %s34_s8 = sadd.s32 1, %s2348_s30 }
  0x13   : > { %2985 = sst [smem:[#allocation16_spill]] %s2336_s27  ;;  %p32_p0 = scmp.ge.s32.totalorder %s31_s7, 2 }
  0x14   : > { %2986 = sst [smem:[#allocation17_spill]] %s2340_s28  ;;  %s41_s9 = sadd.s32 1, %s2332_s26 }
  0x15   : > { %2987 = sst [smem:[#allocation18_spill]] %s2344_s29  ;;  %p48_p1 = scmp.ne.s32.totalorder %s2332_s26, %s2328_s25 }
  0x16   : > { %2988 = sst [smem:[#allocation19_spill]] %s2348_s30  ;;  %p2966_p2 = scmp.eq.s32.totalorder %s2352_s6, 0 }
  0x17   : > { %s3042_s7 = smov (%p32_p0, %s31_s7), 0  ;;  %s3044_s8 = smov (!%p32_p0, %s34_s8), %s2348_s30 }
  0x18   : > { %2989 = sst [smem:[#allocation20_spill]] %s3042_s7  ;;  %p2479_p3 = por %p2966_p2, %p48_p1 }
  0x19   : > { %s2485_s11 = ssub.s32 %s2344_s29, %s3042_s7  ;;  %p36_p4 = scmp.ge.s32.totalorder %s3044_s8, 2 }
  0x1a   : > { %p107_p5 = scmp.eq.s32.totalorder %s2485_s11, 0  ;;  %s163_s12 = sadd.s32 1, %s2308_s20 }
  0x1b   : > { %s3046_s8 = smov (%p36_p4, %s3044_s8), 0  ;;  %p2965_p6 = scmp.lt.s32.totalorder %s2352_s6, 4 }
  0x1c   : > { %2991 = sst [smem:[#allocation21_spill]] %s3046_s8  ;;  %s216_s13 = sand.u32 1, %s2352_s6  }
  0x1d   : > { %s38_s14 = ssub.s32 %s2348_s30, %s3046_s8  ;;  %s218_s16 = sand.u32 1, %s2332_s26  }
  0x1e   : > { %p39_p7 = scmp.eq.s32.totalorder %s38_s14, 0  ;;  %s160_s15 = sor.u32 %s2485_s11, %s38_s14 }
  0x1f   : > { %p161_p8 = scmp.eq.s32.totalorder %s160_s15, 0  ;;  %s1524_s5 = sshll.u32 %s218_s16, 8 }
  0x20   : > { %s2498_s17 = scalar_select %p39_p7, %s2332_s26, %s41_s9  }
  0x21   : > { %s2501_s7 = scalar_select %p161_p8, %s2308_s20, %s163_s12  }
  0x22   : > { %2992 = sst [smem:[#allocation22_spill]] %s2498_s17  ;;  %s1643_s28 = sshll.u32 %s2348_s30, 12 }
  0x23   : > { %2993 = sst [smem:[#allocation23_spill]] %s2501_s7  ;;  %s2994_s0 = sld [smem:[#allocation25_spill]] }
  0x24   : > { %s220_s8 = scalar_lea.vmem [#allocation3], %s1524_s5  ;;  %p2513_p9 = pnand %p2965_p6, %p2479_p3 }
  0x25   : > { %s228_s3 = sshll.u32 %s220_s8, 4  ;;  %s2519_s12 = scalar_lea.sflag [#allocation4], %s216_s13  ;;  %s2517_s3 = int_to_ptr.vmem [resolvable:$true] %s228_s3 }
  0x26   : > { %p2112_p11 = pneg %p2513_p9 }
  0x29   : > { %s2507_s27 = scalar_lea.hbm %s2994_s0, %s1643_s28  ;;  %s2115_s28 = scalar_lea.hbm %s2994_s0, 8192 }
  0x2a   : > { %s2110_s2 = scalar_lea.hbm %s2507_s27, 4096  ;;  %p2116_p0 = scmp.lt.u32.totalorder %s2507_s27, %s2994_s0 }
  0x2b   : > { %p2111_p10 = scmp.ne.s32.totalorder %s2507_s27, %s2110_s2  ;;  %p2117_p1 = scmp.lt.u32.totalorder %s2115_s28, %s2110_s2 }
  0x2c   : > { %p2119_p4 = scmp.lt.u32.totalorder %s2110_s2, %s2507_s27 }
  0x2d   : > { %p2113_p12 = pnand %p2112_p11, %p2111_p10  ;;  %p2118_p3 = por %p2117_p1, %p2116_p0 }
  0x2f   : > { %p2114_p13 = pneg %p2113_p12  ;;  %p2120_p7 = por %p2119_p4, %p2118_p3 }
  0x31   : > { %p2121_p8 = pnand %p2120_p7, %p2114_p13 }
  0x33   : > { %2124 = shalt.err (!%p2121_p8)
}
  0x34   : > { %s2125_s13 = scalar_lea.vmem %s2517_s3, 4096  ;;  %s2354_s14 = smov [#allocation3]  }
  0x35   : > { %p2126_p10 = scmp.ne.s32.totalorder %s2517_s3, %s2125_s13  ;;  %s2130_s15 = sshll.u32 %s2354_s14, 4  ;;  %s2131_s15 = int_to_ptr.vmem [resolvable:$false] %s2130_s15 }
  0x36   : > { %s2132_s16 = scalar_lea.vmem %s2131_s15, 8192  ;;  %p2133_p2 = scmp.lt.s32.totalorder %s2517_s3, %s2131_s15 }
  0x37   : > { %p2128_p12 = pnand %p2126_p10, %p2112_p11  ;;  %p2134_p0 = scmp.lt.s32.totalorder %s2132_s16, %s2125_s13 }
  0x39   : > { %p2129_p6 = pneg %p2128_p12  ;;  %p2135_p1 = por %p2134_p0, %p2133_p2 }
  0x3b   : > { %p2136_p3 = pnand %p2135_p1, %p2129_p6 }
  0x3d   : > { %2139 = shalt.err (!%p2136_p3)
}
  0x3e   : > { %s2967_s2 = smov 256   ;;  %s2356_s4 = smov 16  }
  0x3f   : > { %1807 = dma.hbm_to_vmem [thread:$0]  (!%p2513_p9), %s2507_s27, 4096, %s2517_s3, %s2519_s12, %s2967_s2, %s2967_s2, %s2356_s4  }
  0x40   : > { %s2550_s5 = sadd.s32 4294967295, %s2352_s6   ;;  %s1520_s28 = sadd.s32 4294967294, %s2352_s6  }
  0x41   : > { %p54_p2 = scmp.ne.s32.totalorder %s2328_s25, %s2324_s24  ;;  %p2970_p6 = scmp.eq.s32.totalorder %s2550_s5, 0 }
  0x42   : > { %s109_s8 = sadd.s32 1, %s2320_s23  ;;  %p116_p11 = scmp.ne.s32.totalorder %s2320_s23, %s2316_s22 }
  0x43   : > { %p2561_p13 = por %p2970_p6, %p54_p2  ;;  %p122_p4 = scmp.ne.s32.totalorder %s2316_s22, %s2312_s21 }
  0x44   : > { %s2570_s3 = scalar_select %p107_p5, %s2320_s23, %s109_s8  }
  0x45   : > { %s2996_s10 = scalar_select %p2561_p13, 1, 0 }
  0x46   : > { %2997 = sst [smem:[#allocation24_spill]] %s2570_s3  ;;  %p2998_p9 = scmp.eq.s32.totalorder %s2352_s6, 0 }
  0x47   : > { %p2580_p8 = por %p122_p4, %p2970_p6  ;;  %p173_p10 = scmp.ne.s32.totalorder %s2308_s20, %s2304_s19 }
  0x48   : > { %p2574_p7 = por %p116_p11, %p2998_p9  ;;  %p174_p12 = scmp.eq.s32.totalorder %s2550_s5, 3 }
  0x49   : > { %s3000_s24 = scalar_select %p2580_p8, 1, 0 }
  0x4a   : > { %p179_p0 = scmp.ne.s32.totalorder %s2304_s19, %s2300_s18  ;;  %p180_p5 = scmp.eq.s32.totalorder %s1520_s28, 3 }
  0x4b   : > { %p2589_p1 = por %p174_p12, %p173_p10  ;;  %p1521_p3 = scmp.ge.s32.totalorder %s2352_s6, 1 }
  0x4c   : > { %p2594_p2 = por %p180_p5, %p179_p0  ;;  %p187_p11 = scmp.lt.s32.totalorder %s2352_s6, 5 }
  0x4d   : > { %s3001_s21 = scalar_select %p2589_p1, 1, 0 }
  0x4e   : > { %s3002_s11 = scalar_select %p2594_p2, 1, 0 }
  0x4f   : > { %p2599_p4 = pnand %p1521_p3, %p187_p11  ;;  %s2357_s13 = smov [#allocation6]  }
  0x50   : > { %s199_s14 = sshll.u32 %s2357_s13, 4  ;;  %p3004_p10 = scmp.lt.s32.totalorder %s2352_s6, 4  ;;  %s2603_s14 = int_to_ptr.vmem [resolvable:$true] %s199_s14 }
  0x51   : > { %s3003_s9 = scalar_select %p2599_p4, 1, 0 }
  0x52   : > { %p1800_p9 = pneg %p2599_p4  ;;  %p2611_p12 = pnand %p3004_p10, %p2574_p7 }
  0x53   : > { %s240_s16 = sand.u32 1, %s2320_s23   ;;  %s1644_s8 = sshll.u32 %s2344_s29, 7 }
  0x54   : > { %s3005_s15 = scalar_select %p2611_p12, 1, 0 }
  0x55   : > { %p2618_p0 = pnand %p1800_p9, %p2970_p6  ;;  %s1528_s28 = sshll.u32 %s240_s16, 7 }
  0x56   : > { %s2140_s0 = scalar_lea.hbm %s2955_s1, 4096 }
  0x57   : > { %p2141_p7 = scmp.ne.s32.totalorder %s2955_s1, %s2140_s0  ;;  %p2142_p5 = pneg %p2618_p0 }
  0x58   : > { %p2147_p9 = scmp.lt.u32.totalorder %s2140_s0, %s2955_s1 }
  0x59   : > { %p2143_p3 = pnand %p2142_p5, %p2141_p7 }
  0x5b   : > { %p2144_p11 = pneg %p2143_p3 }
  0x5d   : > { %p2149_p10 = pnand %p2147_p9, %p2144_p11 }
  0x5f   : > { %2152 = shalt.err (!%p2149_p10)
}
  0x60   : > { %s2153_s16 = scalar_lea.vmem %s2603_s14, 4096  ;;  %p2161_p8 = scmp.lt.s32.totalorder %s2603_s14, %s2603_s14 }
  0x61   : > { %p2154_p6 = scmp.ne.s32.totalorder %s2603_s14, %s2153_s16  ;;  %p2162_p13 = scmp.lt.s32.totalorder %s2153_s16, %s2153_s16 }
  0x63   : > { %p2156_p2 = pnand %p2154_p6, %p2142_p5  ;;  %p2163_p4 = por %p2162_p13, %p2161_p8 }
  0x65   : > { %p2157_p1 = pneg %p2156_p2 }
  0x67   : > { %p2164_p12 = pnand %p2163_p4, %p2157_p1 }
  0x69   : > { %2167 = shalt.err (!%p2164_p12)
}
  0x6a   : > { %s2358_s30 = smov 64   ;;  %s2359_s0 = smov 4  }
  0x6b   : > { %1803 = dma.hbm_to_vmem [thread:$0]  (!%p2618_p0), %s2955_s1, 4096, %s2603_s14, [#allocation7], %s2358_s30, %s2358_s30, %s2359_s0  }
  0x6c   : > { %s3007_s27 = sld [smem:[#allocation27_spill]]  ;;  %s242_s16 = scalar_lea.vmem [#allocation8], %s1528_s28 }
  0x6d   : > { %s249_s23 = sshll.u32 %s242_s16, 4  ;;  %p3009_p13 = scmp.ne.s32.totalorder %s3005_s15, 0  ;;  %s2649_s23 = int_to_ptr.vmem [resolvable:$true] %s249_s23 }
  0x6f   : > { %p2170_p8 = pneg %p3009_p13 }
  0x72   : > { %s3008_s3 = smov %s3007_s27  ;;  %s2647_s29 = scalar_lea.hbm %s3007_s27, %s1644_s8 }
  0x73   : > { %s2168_s7 = scalar_lea.hbm %s2647_s29, 2048  ;;  %s2173_s8 = scalar_lea.hbm %s3008_s3, 4096 }
  0x74   : > { %p2169_p6 = scmp.ne.s32.totalorder %s2647_s29, %s2168_s7  ;;  %p2174_p4 = scmp.lt.u32.totalorder %s2647_s29, %s3008_s3 }
  0x75   : > { %p2175_p12 = scmp.lt.u32.totalorder %s2173_s8, %s2168_s7  ;;  %p2177_p7 = scmp.lt.u32.totalorder %s2168_s7, %s2647_s29 }
  0x76   : > { %p2171_p1 = pnand %p2170_p8, %p2169_p6 }
  0x77   : > { %p2176_p0 = por %p2175_p12, %p2174_p4 }
  0x78   : > { %p2172_p2 = pneg %p2171_p1 }
  0x79   : > { %p2178_p5 = por %p2177_p7, %p2176_p0 }
  0x7b   : > { %p2179_p3 = pnand %p2178_p5, %p2172_p2 }
  0x7d   : > { %2182 = shalt.err (!%p2179_p3)
}
  0x7e   : > { %s2183_s28 = scalar_lea.vmem %s2649_s23, 2048  ;;  %s2360_s26 = smov [#allocation8]  }
  0x7f   : > { %p2184_p11 = scmp.ne.s32.totalorder %s2649_s23, %s2183_s28  ;;  %s2188_s17 = sshll.u32 %s2360_s26, 4  ;;  %s2189_s17 = int_to_ptr.vmem [resolvable:$false] %s2188_s17 }
  0x80   : > { %s2190_s2 = scalar_lea.vmem %s2189_s17, 4096  ;;  %p2191_p6 = scmp.lt.s32.totalorder %s2649_s23, %s2189_s17 }
  0x81   : > { %p2186_p9 = pnand %p2184_p11, %p2170_p8  ;;  %p2192_p1 = scmp.lt.s32.totalorder %s2190_s2, %s2183_s28 }
  0x83   : > { %p2187_p10 = pneg %p2186_p9  ;;  %p2193_p4 = por %p2192_p1, %p2191_p6 }
  0x85   : > { %p2194_p12 = pnand %p2193_p4, %p2187_p10 }
  0x87   : > { %2197 = shalt.err (!%p2194_p12)
}
  0x88   : > { %s2361_s7 = smov 128   ;;  %s2362_s13 = smov 8  }
  0x89   : > { %s3010_s27 = smov 256   ;;  %p3011_p8 = scmp.ne.s32.totalorder %s3003_s9, 0 }
  0x8a   : > { %1810 = dma.hbm_to_vmem [thread:$0]  (!%p3009_p13), %s2647_s29, 2048, %s2649_s23, %s2519_s12, %s3010_s27, %s2361_s7, %s2362_s13  }
  0x8b   : > { %269 = sbr.rel (%p3011_p8) target bundleno = 792 (0x318), region = 40  ;;  %s271_s16 = sand.u32 (!%p3011_p8), 1, %s2550_s5  }
  0x8c   : > { %s273_s14 = sand.u32 (!%p3011_p8), 1, %s2328_s25   ;;  %s272_s8 = scalar_lea.sflag (!%p3011_p8), [#allocation4], %s271_s16 }
  0x8d   : > { %s1532_s4 = sshll.u32 (!%p3011_p8), %s273_s14, 8  ;;  %p3012_p2 = scmp.ne.s32.totalorder (!%p3011_p8), %s2996_s10, 0 }
  0x8e   : > { %s2682_s30 = scalar_lea.vmem (!%p3011_p8), [#allocation3], %s1532_s4 }
  0x92   : > { %2283 = dma.done.wait (%p3012_p2), %s272_s8, 4096  }
  0x93   : > { %2285 = vsyncadd (%p3012_p2), %s272_s8, 4294963200  ;;  %p3013_p0 = scmp.eq.s32.totalorder %s2550_s5, 0 }
  0x95   : > { %2287 = dma.done.wait (%p3013_p0), [#allocation7], 4096   ;;  %p3014_p13 = pmov %p3013_p0 }
  0x96   : > { %s286_s23 = sand.u32 1, %s2316_s22   ;;  %p3015_p7 = scmp.ne.s32.totalorder %s3000_s24, 0 }
  0x97   : > { %2289 = vsyncadd (%p3014_p13), [#allocation7], 4294963200  ;;  %s1534_s29 = sshll.u32 %s286_s23, 7 }
  0x98   : > { %s2693_s12 = scalar_lea.vmem [#allocation8], %s1534_s29 }
  0x99   : > { %2291 = dma.done.wait (%p3015_p7), %s272_s8, 2048  }
  0x9a   : > { %2293 = vsyncadd (%p3015_p7), %s272_s8, 4294965248  ;;  %s3016_s10 = sld [smem:[#allocation16_spill]]  ;;  %s321_s9 = sand.u32 1, %s2304_s19  }
  0x9b   : > { %s1535_s5 = sshll.u32 %s321_s9, 8  ;;  %s3017_s17 = sld [smem:[#allocation28_spill]] }
  0x9c   : > { %s2713_s24 = scalar_lea.vmem [#allocation9], %s1535_s5 }
  0xa0   : > { %s2701_s15 = sshll.u32 %s3016_s10, 1  ;;  %p1537_p3 = scmp.ne.s32.totalorder %s3016_s10, 0 }
  0xa1   : > { %p327_p5 = scmp.lt.s32.totalorder %s2701_s15, 3  ;;  %v1942_v0 = vld [vmem:[#allocation6 + $0x40] sm:$0xff] (!%p1537_p3)   ;;  %v1946_v4 = vld [vmem:[#allocation6 + $0x48] sm:$0xff] (!%p1537_p3)   ;;  %v1950_v8 = vld [vmem:[#allocation6 + $0x50] sm:$0xff] (!%p1537_p3)   ;;  %s3018_s27 = sld [smem:[#allocation26_spill]] (!%p1537_p3) }
  0xa2   : > { %337 = sbr.rel (%p1537_p3) target bundleno = 501 (0x1f5), region = 56  ;;  %v1943_v1 = vld [vmem:[#allocation6 + $0xc0] sm:$0xff] (!%p1537_p3)   ;;  %1646 = vmatprep.subr.bf16.mxu0 (!%p1537_p3), %v1942_v0  ;;  %v1947_v5 = vld [vmem:[#allocation6 + $0xc8] sm:$0xff] (!%p1537_p3)   ;;  %v1951_v9 = vld [vmem:[#allocation6 + $0xd0] sm:$0xff] (!%p1537_p3)  }
  0xa3   : > { %s2707_s0 = scalar_select %p327_p5, %s2701_s15, 3 }
  0xa4   : > { %v1944_v2 = vld [vmem:[#allocation6] sm:$0xff] (!%p1537_p3)   ;;  %1710 = vmatprep.subr.bf16.mxu1 (!%p1537_p3), %v1943_v1  ;;  %v1948_v6 = vld [vmem:[#allocation6 + $0x8] sm:$0xff] (!%p1537_p3)   ;;  %v1952_v10 = vld [vmem:[#allocation6 + $0x10] sm:$0xff] (!%p1537_p3)  }
  0xa5   : > { %s329_s2 = scalar_lea.vmem %s3017_s17, %s2707_s0  ;;  %v1945_v3 = vld [vmem:[#allocation6 + $0x80] sm:$0xff] (!%p1537_p3)   ;;  %1647 = vmatpush3.bf16.msra.mxu0 (!%p1537_p3), %v1944_v2  ;;  %v1949_v7 = vld [vmem:[#allocation6 + $0x88] sm:$0xff] (!%p1537_p3)   ;;  %v1953_v11 = vld [vmem:[#allocation6 + $0x90] sm:$0xff] (!%p1537_p3)  }
  0xa6   : > { %1711 = vmatpush3.bf16.msra.mxu1 (!%p1537_p3), %v1945_v3  ;;  %1648 = vmatprep.subr.bf16.mxu0 (!%p1537_p3), %v1946_v4  ;;  %v1954_v12 = vld [vmem:[#allocation6 + $0x58] sm:$0xff] (!%p1537_p3)   ;;  %v1958_v16 = vld [vmem:[#allocation6 + $0x60] sm:$0xff] (!%p1537_p3)   ;;  %v1962_v20 = vld [vmem:[#allocation6 + $0x68] sm:$0xff] (!%p1537_p3)  }
  0xa7   : > { %1712 = vmatprep.subr.bf16.mxu1 (!%p1537_p3), %v1947_v5  ;;  %v1955_v13 = vld [vmem:[#allocation6 + $0xd8] sm:$0xff] (!%p1537_p3)   ;;  %v1959_v17 = vld [vmem:[#allocation6 + $0xe0] sm:$0xff] (!%p1537_p3)   ;;  %v1963_v21 = vld [vmem:[#allocation6 + $0xe8] sm:$0xff] (!%p1537_p3)  }
  0xa8   : > { %v1956_v14 = vld [vmem:[#allocation6 + $0x18] sm:$0xff] (!%p1537_p3)   ;;  %v1960_v18 = vld [vmem:[#allocation6 + $0x20] sm:$0xff] (!%p1537_p3)   ;;  %v1964_v22 = vld [vmem:[#allocation6 + $0x28] sm:$0xff] (!%p1537_p3)  }
  0xa9   : > { %1649 = vmatpush3.bf16.msra.mxu0 %v1948_v6  ;;  %v1957_v15 = vld [vmem:[#allocation6 + $0x98] sm:$0xff]   ;;  %v1961_v19 = vld [vmem:[#allocation6 + $0xa0] sm:$0xff]   ;;  %v1965_v23 = vld [vmem:[#allocation6 + $0xa8] sm:$0xff]  }
  0xaa   : > { %1713 = vmatpush3.bf16.msra.mxu1 %v1949_v7  ;;  %1650 = vmatprep.subr.bf16.mxu0 %v1950_v8  ;;  %v1966_v24 = vld [vmem:[#allocation6 + $0x70] sm:$0xff]   ;;  %v1970_v28 = vld [vmem:[#allocation6 + $0x78] sm:$0xff]   ;;  %v2751_v2 = vld [vmem:[%s3018_s27] ss:$0 sm:$0xff] }
  0xab   : > { %1714 = vmatprep.subr.bf16.mxu1 %v1951_v9  ;;  %v1967_v25 = vld [vmem:[#allocation6 + $0xf0] sm:$0xff]   ;;  %v1971_v29 = vld [vmem:[#allocation6 + $0xf8] sm:$0xff]  }
  0xac   : > { %v1968_v26 = vld [vmem:[#allocation6 + $0x30] sm:$0xff]   ;;  %v1972_v30 = vld [vmem:[#allocation6 + $0x38] sm:$0xff]  }
  0xad   : > { %1651 = vmatpush3.bf16.msra.mxu0 %v1952_v10  ;;  %v1969_v27 = vld [vmem:[#allocation6 + $0xb0] sm:$0xff]   ;;  %v1973_v31 = vld [vmem:[#allocation6 + $0xb8] sm:$0xff]  }
  0xae   : > { %1715 = vmatpush3.bf16.msra.mxu1 %v1953_v11  ;;  %1652 = vmatprep.subr.bf16.mxu0 %v1954_v12  ;;  %v1974_v32 = vld [vmem:[%s2682_s30] ss:$16 sps:$4 sm:$0xff]   ;;  %v1976_v33 = vld [vmem:[%s2682_s30 + $0x4] ss:$16 sps:$4 sm:$0xff]   ;;  %v1977_v34 = vld [vmem:[%s2682_s30 + $0x8] ss:$16 sps:$4 sm:$0xff]  }
  0xaf   : > { %1716 = vmatprep.subr.bf16.mxu1 %v1955_v13  ;;  %v1979_v35 = vld [vmem:[%s2682_s30 + $0xc] ss:$16 sps:$4 sm:$0xff]   ;;  %825 = vmatprep.mubr.bf16.mxu0 %v1976_v33  ;;  %v1980_v36 = vld [vmem:[%s2682_s30 + $0x24] ss:$16 sps:$4 sm:$0xff]   ;;  %v1984_v38 = vld [vmem:[%s2682_s30 + $0x20] ss:$16 sps:$4 sm:$0xff]  }
  0xb0   : > { %922 = vmatprep.mubr.bf16.mxu1 %v1979_v35  ;;  %v1982_v37 = vld [vmem:[%s2682_s30 + $0x2c] ss:$16 sps:$4 sm:$0xff]   ;;  %v1985_v39 = vld [vmem:[%s2682_s30 + $0x28] ss:$16 sps:$4 sm:$0xff]   ;;  %v1986_v40 = vld [vmem:[%s2682_s30 + $0x44] ss:$16 sps:$4 sm:$0xff]  }
  0xb1   : > { %1653 = vmatpush3.bf16.msra.mxu0 %v1956_v14  ;;  %v1988_v41 = vld [vmem:[%s2682_s30 + $0x4c] ss:$16 sps:$4 sm:$0xff]   ;;  %v1990_v42 = vld [vmem:[%s2682_s30 + $0x40] ss:$16 sps:$4 sm:$0xff]   ;;  %v1991_v43 = vld [vmem:[%s2682_s30 + $0x48] ss:$16 sps:$4 sm:$0xff]  }
  0xb2   : > { %1717 = vmatpush3.bf16.msra.mxu1 %v1957_v15  ;;  %1654 = vmatprep.subr.bf16.mxu0 %v1958_v16  ;;  %v1992_v44 = vld [vmem:[%s2682_s30 + $0x64] ss:$16 sps:$4 sm:$0xff]   ;;  %v1994_v45 = vld [vmem:[%s2682_s30 + $0x6c] ss:$16 sps:$4 sm:$0xff]   ;;  %v1996_v46 = vld [vmem:[%s2682_s30 + $0x60] ss:$16 sps:$4 sm:$0xff]  }
  0xb3   : > { %1718 = vmatprep.subr.bf16.mxu1 %v1959_v17  ;;  %v1997_v47 = vld [vmem:[%s2682_s30 + $0x68] ss:$16 sps:$4 sm:$0xff]   ;;  %v1998_v48 = vld [vmem:[%s2682_s30 + $0x84] ss:$16 sps:$4 sm:$0xff]   ;;  %v2000_v49 = vld [vmem:[%s2682_s30 + $0x8c] ss:$16 sps:$4 sm:$0xff]  }
  0xb4   : > { %v2002_v50 = vld [vmem:[%s2682_s30 + $0x80] ss:$16 sps:$4 sm:$0xff]   ;;  %v2003_v51 = vld [vmem:[%s2682_s30 + $0x88] ss:$16 sps:$4 sm:$0xff]   ;;  %v2004_v52 = vld [vmem:[%s2682_s30 + $0xa4] ss:$16 sps:$4 sm:$0xff]  }
  0xb5   : > { %1655 = vmatpush3.bf16.msra.mxu0 %v1960_v18  ;;  %v2006_v53 = vld [vmem:[%s2682_s30 + $0xac] ss:$16 sps:$4 sm:$0xff]   ;;  %v2008_v54 = vld [vmem:[%s2682_s30 + $0xa0] ss:$16 sps:$4 sm:$0xff]   ;;  %v2009_v55 = vld [vmem:[%s2682_s30 + $0xa8] ss:$16 sps:$4 sm:$0xff]  }
  0xb6   : > { %1719 = vmatpush3.bf16.msra.mxu1 %v1961_v19  ;;  %1656 = vmatprep.subr.bf16.mxu0 %v1962_v20  ;;  %v2010_v56 = vld [vmem:[%s2682_s30 + $0xc4] ss:$16 sps:$4 sm:$0xff]   ;;  %v2012_v57 = vld [vmem:[%s2682_s30 + $0xcc] ss:$16 sps:$4 sm:$0xff]   ;;  %v2014_v58 = vld [vmem:[%s2682_s30 + $0xc0] ss:$16 sps:$4 sm:$0xff]  }
  0xb7   : > { %1720 = vmatprep.subr.bf16.mxu1 %v1963_v21  ;;  %v2015_v59 = vld [vmem:[%s2682_s30 + $0xc8] ss:$16 sps:$4 sm:$0xff]   ;;  %v2016_v60 = vld [vmem:[%s2682_s30 + $0xe4] ss:$16 sps:$4 sm:$0xff]   ;;  %v2018_v61 = vld [vmem:[%s2682_s30 + $0xec] ss:$16 sps:$4 sm:$0xff]  }
  0xb8   : > { %v2020_v62 = vld [vmem:[%s2682_s30 + $0xe0] ss:$16 sps:$4 sm:$0xff]   ;;  %v2021_v63 = vld [vmem:[%s2682_s30 + $0xe8] ss:$16 sps:$4 sm:$0xff]  }
  0xb9   : > { %1657 = vmatpush3.bf16.msra.mxu0 %v1964_v22 }
  0xba   : > { %1721 = vmatpush3.bf16.msra.mxu1 %v1965_v23  ;;  %1658 = vmatprep.subr.bf16.mxu0 %v1966_v24 }
  0xbb   : > { %1722 = vmatprep.subr.bf16.mxu1 %v1967_v25 }
  0xbd   : > { %1659 = vmatpush3.bf16.msra.mxu0 %v1968_v26 }
  0xbe   : > { %1723 = vmatpush3.bf16.msra.mxu1 %v1969_v27  ;;  %1660 = vmatprep.subr.bf16.mxu0 %v1970_v28 }
  0xbf   : > { %1724 = vmatprep.subr.bf16.mxu1 %v1971_v29 }
  0xc1   : > { %1661 = vmatpush3.bf16.msra.mxu0 %v1972_v30 }
  0xc2   : > { %1725 = vmatpush3.bf16.msra.mxu1 %v1973_v31 }
  0xc4   : > { %826 = vmatmul.mubr.bf16.vlgmr.msra.gmra.mrb[0].mxu0 %v1974_v32 }
  0xc5   : > { %923 = vmatmul.mubr.bf16.vlgmr.msra.gmra.mrb[0].mxu1 %v1977_v34  ;;  %833 = vmatprep.mubr.bf16.mxu0 %v1980_v36 }
  0xc6   : > { %930 = vmatprep.mubr.bf16.mxu1 %v1982_v37 }
  0xcc   : > { %834 = vmatmul.mubr.bf16.gmra.mrb[4].mxu0 %v1984_v38 }
  0xcd   : > { %931 = vmatmul.mubr.bf16.gmra.mrb[4].mxu1 %v1985_v39  ;;  %841 = vmatprep.mubr.bf16.mxu0 %v1986_v40 }
  0xce   : > { %938 = vmatprep.mubr.bf16.mxu1 %v1988_v41 }
  0xd4   : > { %842 = vmatmul.mubr.bf16.gmra.mrb[8].mxu0 %v1990_v42 }
  0xd5   : > { %939 = vmatmul.mubr.bf16.gmra.mrb[8].mxu1 %v1991_v43  ;;  %849 = vmatprep.mubr.bf16.mxu0 %v1992_v44 }
  0xd6   : > { %946 = vmatprep.mubr.bf16.mxu1 %v1994_v45 }
  0xdc   : > { %850 = vmatmul.mubr.bf16.gmra.mrb[12].mxu0 %v1996_v46 }
  0xdd   : > { %947 = vmatmul.mubr.bf16.gmra.mrb[12].mxu1 %v1997_v47  ;;  %857 = vmatprep.mubr.bf16.mxu0 %v1998_v48 }
  0xde   : > { %954 = vmatprep.mubr.bf16.mxu1 %v2000_v49 }
  0xe4   : > { %858 = vmatmul.mubr.bf16.gmra.mrb[16].mxu0 %v2002_v50 }
  0xe5   : > { %955 = vmatmul.mubr.bf16.gmra.mrb[16].mxu1 %v2003_v51  ;;  %865 = vmatprep.mubr.bf16.mxu0 %v2004_v52 }
  0xe6   : > { %962 = vmatprep.mubr.bf16.mxu1 %v2006_v53 }
  0xec   : > { %866 = vmatmul.mubr.bf16.gmra.mrb[20].mxu0 %v2008_v54 }
  0xed   : > { %963 = vmatmul.mubr.bf16.gmra.mrb[20].mxu1 %v2009_v55  ;;  %873 = vmatprep.mubr.bf16.mxu0 %v2010_v56 }
  0xee   : > { %970 = vmatprep.mubr.bf16.mxu1 %v2012_v57 }
  0xf4   : > { %874 = vmatmul.mubr.bf16.gmra.mrb[24].mxu0 %v2014_v58 }
  0xf5   : > { %971 = vmatmul.mubr.bf16.gmra.mrb[24].mxu1 %v2015_v59  ;;  %881 = vmatprep.mubr.bf16.mxu0 %v2016_v60 }
  0xf6   : > { %978 = vmatprep.mubr.bf16.mxu1 %v2018_v61 }
  0xfc   : > { %882 = vmatmul.mubr.bf16.gmra.mrb[28].mxu0 %v2020_v62 }
  0xfd   : > { %979 = vmatmul.mubr.bf16.gmra.mrb[28].mxu1 %v2021_v63 }
 0x197   : > { %v1662_v0 = vpop.f32.mrb[0].mxu0 }
 0x198   : > { %v1726_v1 = vpop.f32.mrb[0].mxu1  ;;  %v1663_v3 = vpop.f32.mrb[1].mxu0 }
 0x199   : > { %v1664_v4 = vadd.f32 %v1663_v3, %v1662_v0  ;;  %v1727_v5 = vpop.f32.mrb[1].mxu1  ;;  %v1665_v6 = vpop.f32.mrb[2].mxu0 }
 0x19a   : > { %v1728_v7 = vadd.f32 %v1727_v5, %v1726_v1  ;;  %v1729_v8 = vpop.f32.mrb[2].mxu1  ;;  %v1666_v9 = vpop.f32.mrb[3].mxu0 }
 0x19b   : > { %v828_v10 = vadd.f32 %v1664_v4, %v2751_v2  ;;  %v1667_v11 = vadd.f32 %v1666_v9, %v1665_v6  ;;  %v1730_v12 = vpop.f32.mrb[3].mxu1 }
 0x19c   : > { %v1731_v13 = vadd.f32 %v1730_v12, %v1729_v8 }
 0x19d   : > { %v925_v14 = vadd.f32 %v1728_v7, %v828_v10  ;;  %v831_v15 = vadd.f32 %v1667_v11, %v2751_v2 }
 0x19f   : > { %v1603_v16 = vmul.f32 -1.442695, %v925_v14  ;;  %v928_v17 = vadd.f32 %v1731_v13, %v831_v15  ;;  %v1668_v18 = vpop.f32.mrb[4].mxu0 }
 0x1a0   : > { %v1732_v19 = vpop.f32.mrb[4].mxu1  ;;  %v1669_v20 = vpop.f32.mrb[5].mxu0 }
 0x1a1   : > { %2022 = vpow2.f32 %v1603_v16  ;;  %v1604_v21 = vmul.f32 -1.442695, %v928_v17  ;;  %v1670_v22 = vadd.f32 %v1669_v20, %v1668_v18  ;;  %v1733_v23 = vpop.f32.mrb[5].mxu1  ;;  %v1671_v24 = vpop.f32.mrb[6].mxu0 }
 0x1a2   : > { %v1734_v25 = vadd.f32 %v1733_v23, %v1732_v19  ;;  %v1735_v26 = vpop.f32.mrb[6].mxu1  ;;  %v1672_v27 = vpop.f32.mrb[7].mxu0 }
 0x1a3   : > { %2024 = vpow2.f32 %v1604_v21  ;;  %v836_v28 = vadd.f32 %v1670_v22, %v2751_v2  ;;  %v1673_v29 = vadd.f32 %v1672_v27, %v1671_v24  ;;  %v1736_v30 = vpop.f32.mrb[7].mxu1 }
 0x1a4   : > { %v1737_v31 = vadd.f32 %v1736_v30, %v1735_v26 }
 0x1a5   : > { %v933_v32 = vadd.f32 %v1734_v25, %v836_v28  ;;  %v839_v33 = vadd.f32 %v1673_v29, %v2751_v2 }
 0x1a7   : > { %v1605_v34 = vmul.f32 -1.442695, %v933_v32  ;;  %v936_v35 = vadd.f32 %v1737_v31, %v839_v33  ;;  %v1674_v36 = vpop.f32.mrb[8].mxu0 }
 0x1a8   : > { %v1738_v37 = vpop.f32.mrb[8].mxu1  ;;  %v1675_v38 = vpop.f32.mrb[9].mxu0 }
 0x1a9   : > { %2026 = vpow2.f32 %v1605_v34  ;;  %v1606_v39 = vmul.f32 -1.442695, %v936_v35  ;;  %v1676_v40 = vadd.f32 %v1675_v38, %v1674_v36  ;;  %v1739_v41 = vpop.f32.mrb[9].mxu1  ;;  %v1677_v42 = vpop.f32.mrb[10].mxu0 }
 0x1aa   : > { %v1740_v43 = vadd.f32 %v1739_v41, %v1738_v37  ;;  %v1741_v44 = vpop.f32.mrb[10].mxu1  ;;  %v1678_v45 = vpop.f32.mrb[11].mxu0 }
 0x1ab   : > { %v2023_v46 = vpop.eup %2022  ;;  %2028 = vpow2.f32 %v1606_v39  ;;  %v844_v47 = vadd.f32 %v1676_v40, %v2751_v2  ;;  %v1679_v48 = vadd.f32 %v1678_v45, %v1677_v42  ;;  %v1742_v49 = vpop.f32.mrb[11].mxu1 }
 0x1ac   : > { %v1035_v50 = vadd.f32 1.0, %v2023_v46  ;;  %v1743_v51 = vadd.f32 %v1742_v49, %v1741_v44 }
 0x1ad   : > { %v2025_v52 = vpop.eup %2024  ;;  %v941_v53 = vadd.f32 %v1740_v43, %v844_v47  ;;  %v847_v54 = vadd.f32 %v1679_v48, %v2751_v2 }
 0x1ae   : > { %2030 = vrcp.f32 %v1035_v50  ;;  %v1036_v55 = vadd.f32 1.0, %v2025_v52 }
 0x1af   : > { %v1607_v56 = vmul.f32 -1.442695, %v941_v53  ;;  %v944_v57 = vadd.f32 %v1743_v51, %v847_v54  ;;  %v1680_v58 = vpop.f32.mrb[12].mxu0 }
 0x1b0   : > { %2032 = vrcp.f32 %v1036_v55  ;;  %v1744_v59 = vpop.f32.mrb[12].mxu1  ;;  %v1681_v60 = vpop.f32.mrb[13].mxu0 }
 0x1b1   : > { %2034 = vpow2.f32 %v1607_v56  ;;  %v1608_v61 = vmul.f32 -1.442695, %v944_v57  ;;  %v1682_v62 = vadd.f32 %v1681_v60, %v1680_v58  ;;  %v1745_v63 = vpop.f32.mrb[13].mxu1  ;;  %v1683_v0 = vpop.f32.mrb[14].mxu0 }
 0x1b2   : > { %v1746_v1 = vadd.f32 %v1745_v63, %v1744_v59  ;;  %v1747_v3 = vpop.f32.mrb[14].mxu1  ;;  %v1684_v4 = vpop.f32.mrb[15].mxu0 }
 0x1b3   : > { %v2027_v5 = vpop.eup %2026  ;;  %2036 = vpow2.f32 %v1608_v61  ;;  %v852_v6 = vadd.f32 %v1682_v62, %v2751_v2  ;;  %v1685_v7 = vadd.f32 %v1684_v4, %v1683_v0  ;;  %v1748_v8 = vpop.f32.mrb[15].mxu1 }
 0x1b4   : > { %v1037_v9 = vadd.f32 1.0, %v2027_v5  ;;  %v1749_v10 = vadd.f32 %v1748_v8, %v1747_v3 }
 0x1b5   : > { %v2029_v11 = vpop.eup %2028  ;;  %v949_v12 = vadd.f32 %v1746_v1, %v852_v6  ;;  %v855_v13 = vadd.f32 %v1685_v7, %v2751_v2 }
 0x1b6   : > { %2038 = vrcp.f32 %v1037_v9  ;;  %v1038_v14 = vadd.f32 1.0, %v2029_v11 }
 0x1b7   : > { %v1609_v15 = vmul.f32 -1.442695, %v949_v12  ;;  %v952_v16 = vadd.f32 %v1749_v10, %v855_v13  ;;  %v1686_v17 = vpop.f32.mrb[16].mxu0 }
 0x1b8   : > { %v2031_v18 = vpop.eup %2030  ;;  %2040 = vrcp.f32 %v1038_v14  ;;  %v1750_v19 = vpop.f32.mrb[16].mxu1 }
 0x1b9   : > { %v1687_v20 = vpop.f32.mrb[17].mxu0  ;;  %1083 = vst [vmem:[#allocation2] sm:$0xff] %v2031_v18  ;;  %2042 = vpow2.f32 %v1609_v15  ;;  %v1610_v21 = vmul.f32 -1.442695, %v952_v16  ;;  %v1751_v23 = vpop.f32.mrb[17].mxu1 }
 0x1ba   : > { %v1688_v22 = vadd.f32 %v1687_v20, %v1686_v17  ;;  %v1689_v24 = vpop.f32.mrb[18].mxu0  ;;  %v2033_v25 = vpop.eup %2032  ;;  %v1752_v26 = vadd.f32 %v1751_v23, %v1750_v19 }
 0x1bb   : > { %v1753_v27 = vpop.f32.mrb[18].mxu1  ;;  %v1690_v28 = vpop.f32.mrb[19].mxu0  ;;  %1084 = vst [vmem:[#allocation2 + $0x8] sm:$0xff] %v2033_v25  ;;  %2044 = vpow2.f32 %v1610_v21 }
 0x1bc   : > { %v2035_v29 = vpop.eup %2034  ;;  %v860_v30 = vadd.f32 %v1688_v22, %v2751_v2  ;;  %v1691_v31 = vadd.f32 %v1690_v28, %v1689_v24  ;;  %v1754_v32 = vpop.f32.mrb[19].mxu1 }
 0x1bd   : > { %v1039_v33 = vadd.f32 1.0, %v2035_v29  ;;  %v1755_v34 = vadd.f32 %v1754_v32, %v1753_v27  ;;  %v2037_v35 = vpop.eup %2036 }
 0x1be   : > { %v957_v36 = vadd.f32 %v1752_v26, %v860_v30  ;;  %v863_v37 = vadd.f32 %v1691_v31, %v2751_v2  ;;  %v1040_v38 = vadd.f32 1.0, %v2037_v35 }
 0x1bf   : > { %2046 = vrcp.f32 %v1039_v33  ;;  %v1692_v41 = vpop.f32.mrb[20].mxu0 }
 0x1c0   : > { %v1611_v39 = vmul.f32 -1.442695, %v957_v36  ;;  %v960_v40 = vadd.f32 %v1755_v34, %v863_v37  ;;  %v2039_v42 = vpop.eup %2038  ;;  %2048 = vrcp.f32 %v1040_v38  ;;  %v1756_v43 = vpop.f32.mrb[20].mxu1 }
 0x1c1   : > { %v1693_v44 = vpop.f32.mrb[21].mxu0  ;;  %1085 = vst [vmem:[#allocation2 + $0x10] sm:$0xff] %v2039_v42  ;;  %v1757_v47 = vpop.f32.mrb[21].mxu1 }
 0x1c2   : > { %2050 = vpow2.f32 %v1611_v39  ;;  %v1612_v45 = vmul.f32 -1.442695, %v960_v40  ;;  %v1694_v46 = vadd.f32 %v1693_v44, %v1692_v41  ;;  %v1695_v48 = vpop.f32.mrb[22].mxu0  ;;  %v2041_v49 = vpop.eup %2040  ;;  %v1758_v50 = vadd.f32 %v1757_v47, %v1756_v43 }
 0x1c3   : > { %v1759_v51 = vpop.f32.mrb[22].mxu1  ;;  %v1696_v52 = vpop.f32.mrb[23].mxu0  ;;  %1086 = vst [vmem:[#allocation2 + $0x18] sm:$0xff] %v2041_v49 }
 0x1c4   : > { %v2043_v53 = vpop.eup %2042  ;;  %2052 = vpow2.f32 %v1612_v45  ;;  %v868_v54 = vadd.f32 %v1694_v46, %v2751_v2  ;;  %v1697_v55 = vadd.f32 %v1696_v52, %v1695_v48  ;;  %v1760_v56 = vpop.f32.mrb[23].mxu1 }
 0x1c5   : > { %v1041_v57 = vadd.f32 1.0, %v2043_v53  ;;  %v1761_v58 = vadd.f32 %v1760_v56, %v1759_v51  ;;  %v2045_v59 = vpop.eup %2044 }
 0x1c6   : > { %v965_v60 = vadd.f32 %v1758_v50, %v868_v54  ;;  %v871_v61 = vadd.f32 %v1697_v55, %v2751_v2  ;;  %v1042_v62 = vadd.f32 1.0, %v2045_v59 }
 0x1c7   : > { %2054 = vrcp.f32 %v1041_v57  ;;  %v1698_v1 = vpop.f32.mrb[24].mxu0 }
 0x1c8   : > { %v1613_v63 = vmul.f32 -1.442695, %v965_v60  ;;  %v968_v0 = vadd.f32 %v1761_v58, %v871_v61  ;;  %2056 = vrcp.f32 %v1042_v62  ;;  %v1762_v4 = vpop.f32.mrb[24].mxu1  ;;  %v1699_v5 = vpop.f32.mrb[25].mxu0 }
 0x1c9   : > { %v2047_v3 = vpop.eup %2046  ;;  %v1700_v7 = vadd.f32 %v1699_v5, %v1698_v1  ;;  %v1763_v8 = vpop.f32.mrb[25].mxu1 }
 0x1ca   : > { %1087 = vst [vmem:[#allocation2 + $0x20] sm:$0xff] %v2047_v3  ;;  %2058 = vpow2.f32 %v1613_v63  ;;  %v1614_v6 = vmul.f32 -1.442695, %v968_v0  ;;  %v1701_v9 = vpop.f32.mrb[26].mxu0  ;;  %v2049_v10 = vpop.eup %2048  ;;  %v1764_v11 = vadd.f32 %v1763_v8, %v1762_v4 }
 0x1cb   : > { %v1765_v12 = vpop.f32.mrb[26].mxu1  ;;  %v1702_v13 = vpop.f32.mrb[27].mxu0  ;;  %1088 = vst [vmem:[#allocation2 + $0x28] sm:$0xff] %v2049_v10  ;;  %v876_v15 = vadd.f32 %v1700_v7, %v2751_v2 }
 0x1cc   : > { %v2051_v14 = vpop.eup %2050  ;;  %2060 = vpow2.f32 %v1614_v6  ;;  %v1703_v16 = vadd.f32 %v1702_v13, %v1701_v9  ;;  %v1766_v17 = vpop.f32.mrb[27].mxu1 }
 0x1cd   : > { %v1043_v18 = vadd.f32 1.0, %v2051_v14  ;;  %v1767_v19 = vadd.f32 %v1766_v17, %v1765_v12  ;;  %v973_v21 = vadd.f32 %v1764_v11, %v876_v15 }
 0x1ce   : > { %v2053_v20 = vpop.eup %2052  ;;  %v879_v22 = vadd.f32 %v1703_v16, %v2751_v2 }
 0x1cf   : > { %2062 = vrcp.f32 %v1043_v18  ;;  %v1044_v23 = vadd.f32 1.0, %v2053_v20  ;;  %v1615_v24 = vmul.f32 -1.442695, %v973_v21  ;;  %v1704_v26 = vpop.f32.mrb[28].mxu0 }
 0x1d0   : > { %v976_v25 = vadd.f32 %v1767_v19, %v879_v22  ;;  %v1768_v28 = vpop.f32.mrb[28].mxu1  ;;  %v1705_v29 = vpop.f32.mrb[29].mxu0 }
 0x1d1   : > { %v2055_v27 = vpop.eup %2054  ;;  %2064 = vrcp.f32 %v1044_v23  ;;  %v1706_v31 = vadd.f32 %v1705_v29, %v1704_v26  ;;  %v1769_v32 = vpop.f32.mrb[29].mxu1 }
 0x1d2   : > { %1089 = vst [vmem:[#allocation2 + $0x30] sm:$0xff] %v2055_v27  ;;  %2066 = vpow2.f32 %v1615_v24  ;;  %v1616_v30 = vmul.f32 -1.442695, %v976_v25  ;;  %v1707_v33 = vpop.f32.mrb[30].mxu0  ;;  %v2057_v34 = vpop.eup %2056  ;;  %v1770_v35 = vadd.f32 %v1769_v32, %v1768_v28 }
 0x1d3   : > { %v1771_v36 = vpop.f32.mrb[30].mxu1  ;;  %v1708_v37 = vpop.f32.mrb[31].mxu0  ;;  %1090 = vst [vmem:[#allocation2 + $0x38] sm:$0xff] %v2057_v34  ;;  %v884_v39 = vadd.f32 %v1706_v31, %v2751_v2 }
 0x1d4   : > { %v2059_v38 = vpop.eup %2058  ;;  %2068 = vpow2.f32 %v1616_v30  ;;  %v1709_v40 = vadd.f32 %v1708_v37, %v1707_v33  ;;  %v1772_v41 = vpop.f32.mrb[31].mxu1 }
 0x1d5   : > { %v1045_v42 = vadd.f32 1.0, %v2059_v38  ;;  %v1773_v43 = vadd.f32 %v1772_v41, %v1771_v36  ;;  %v981_v45 = vadd.f32 %v1770_v35, %v884_v39 }
 0x1d6   : > { %v2061_v44 = vpop.eup %2060  ;;  %v887_v46 = vadd.f32 %v1709_v40, %v2751_v2 }
 0x1d7   : > { %2070 = vrcp.f32 %v1045_v42  ;;  %v1046_v47 = vadd.f32 1.0, %v2061_v44  ;;  %v1617_v48 = vmul.f32 -1.442695, %v981_v45 }
 0x1d8   : > { %v984_v49 = vadd.f32 %v1773_v43, %v887_v46 }
 0x1d9   : > { %v2063_v50 = vpop.eup %2062  ;;  %2072 = vrcp.f32 %v1046_v47 }
 0x1da   : > { %1091 = vst [vmem:[#allocation2 + $0x40] sm:$0xff] %v2063_v50  ;;  %2074 = vpow2.f32 %v1617_v48  ;;  %v1618_v51 = vmul.f32 -1.442695, %v984_v49 }
 0x1db   : > { %v2065_v52 = vpop.eup %2064 }
 0x1dc   : > { %v2067_v53 = vpop.eup %2066  ;;  %1092 = vst [vmem:[#allocation2 + $0x48] sm:$0xff] %v2065_v52  ;;  %2076 = vpow2.f32 %v1618_v51 }
 0x1dd   : > { %v1047_v54 = vadd.f32 1.0, %v2067_v53 }
 0x1de   : > { %v2069_v55 = vpop.eup %2068 }
 0x1df   : > { %2078 = vrcp.f32 %v1047_v54  ;;  %v1048_v56 = vadd.f32 1.0, %v2069_v55 }
 0x1e1   : > { %v2071_v57 = vpop.eup %2070  ;;  %2080 = vrcp.f32 %v1048_v56 }
 0x1e2   : > { %1093 = vst [vmem:[#allocation2 + $0x50] sm:$0xff] %v2071_v57 }
 0x1e3   : > { %v2073_v2 = vpop.eup %2072 }
 0x1e4   : > { %v2075_v58 = vpop.eup %2074  ;;  %1094 = vst [vmem:[#allocation2 + $0x58] sm:$0xff] %v2073_v2 }
 0x1e5   : > { %v1049_v59 = vadd.f32 1.0, %v2075_v58 }
 0x1e6   : > { %v2077_v60 = vpop.eup %2076 }
 0x1e7   : > { %2082 = vrcp.f32 %v1049_v59  ;;  %v1050_v61 = vadd.f32 1.0, %v2077_v60 }
 0x1e9   : > { %v2079_v62 = vpop.eup %2078  ;;  %2084 = vrcp.f32 %v1050_v61 }
 0x1ea   : > { %1095 = vst [vmem:[#allocation2 + $0x60] sm:$0xff] %v2079_v62 }
 0x1eb   : > { %v2081_v63 = vpop.eup %2080 }
 0x1ec   : > { %1096 = vst [vmem:[#allocation2 + $0x68] sm:$0xff] %v2081_v63 }
 0x1f1   : > { %v2083_v0 = vpop.eup %2082 }
 0x1f2   : > { %1097 = vst [vmem:[#allocation2 + $0x70] sm:$0xff] %v2083_v0 }
 0x1f3   : > { %v2085_v1 = vpop.eup %2084 }
 0x1f4   : > { %1098 = vst [vmem:[#allocation2 + $0x78] sm:$0xff] %v2085_v1 }
 0x1f5 PF: > { %v2086_v3 = vld [vmem:[%s2693_s12 + $0x4] ss:$8 sps:$4 sm:$0xff]   ;;  %v2088_v4 = vld [vmem:[%s2693_s12] ss:$8 sps:$4 sm:$0xff]   ;;  %v2363_v5 = vmov 0   ;;  %v1101_v26 = vld [vmem:[#allocation2 + $0x10] sm:$0xff]  ;;  %v1141_v44 = vlaneseq }
 0x1f6   : > { %1263 = vmatprep.mubr.bf16.mxu0 %v2363_v5  ;;  %1303 = vmatprep.mubr.bf16.mxu1 %v2363_v5  ;;  %v2089_v6 = vld [vmem:[%s2693_s12 + $0x14] ss:$8 sps:$4 sm:$0xff]   ;;  %v2091_v7 = vld [vmem:[%s2693_s12 + $0x10] ss:$8 sps:$4 sm:$0xff]   ;;  %v2092_v8 = vld [vmem:[%s2693_s12 + $0x24] ss:$8 sps:$4 sm:$0xff]  }
 0x1f7   : > { %1231 = vmatprep.subr.bf16.mxu0 %v2086_v3  ;;  %1774 = vmatprep.subr.bf16.mxu1 %v2086_v3  ;;  %v2094_v9 = vld [vmem:[%s2693_s12 + $0x20] ss:$8 sps:$4 sm:$0xff]   ;;  %v2095_v10 = vld [vmem:[%s2693_s12 + $0x34] ss:$8 sps:$4 sm:$0xff]   ;;  %v2097_v11 = vld [vmem:[%s2693_s12 + $0x30] ss:$8 sps:$4 sm:$0xff]  }
 0x1f8   : > { %1232 = vmatpush1.bf16.msra.mxu0 %v2088_v4  ;;  %1782 = vmatpush1.bf16.msra.mxu1 %v2088_v4  ;;  %v2098_v12 = vld [vmem:[%s2693_s12 + $0x44] ss:$8 sps:$4 sm:$0xff]   ;;  %v2100_v13 = vld [vmem:[%s2693_s12 + $0x40] ss:$8 sps:$4 sm:$0xff]   ;;  %v2101_v14 = vld [vmem:[%s2693_s12 + $0x54] ss:$8 sps:$4 sm:$0xff]  }
 0x1f9   : > { %1233 = vmatprep.subr.bf16.mxu0 %v2089_v6  ;;  %1775 = vmatprep.subr.bf16.mxu1 %v2089_v6  ;;  %v2103_v15 = vld [vmem:[%s2693_s12 + $0x50] ss:$8 sps:$4 sm:$0xff]   ;;  %v2104_v16 = vld [vmem:[%s2693_s12 + $0x64] ss:$8 sps:$4 sm:$0xff]   ;;  %v2106_v17 = vld [vmem:[%s2693_s12 + $0x60] ss:$8 sps:$4 sm:$0xff]  }
 0x1fa   : > { %v2107_v18 = vld [vmem:[%s2693_s12 + $0x74] ss:$8 sps:$4 sm:$0xff]   ;;  %v2109_v19 = vld [vmem:[%s2693_s12 + $0x70] ss:$8 sps:$4 sm:$0xff]   ;;  %v1099_v20 = vld [vmem:[#allocation2] sm:$0xff]  ;;  %v1142_v45 = vshrl.u32 %v1141_v44, 7 }
 0x1fb   : > { %v1100_v21 = vld [vmem:[#allocation2 + $0x8] sm:$0xff]  ;;  %v1107_v22 = vld [vmem:[#allocation2 + $0x40] sm:$0xff]  ;;  %v1102_v27 = vld [vmem:[#allocation2 + $0x18] sm:$0xff]  ;;  %s3020_s8 = sld [smem:[#allocation17_spill]]  ;;  %s1393_s12 = sshll.u32 %s2713_s24, 4  ;;  %s2866_s12 = int_to_ptr.vmem [resolvable:$true] %s1393_s12 }
 0x1fc   : > { %1234 = vmatpush1.bf16.msra.mxu0 %v2091_v7  ;;  %1783 = vmatpush1.bf16.msra.mxu1 %v2091_v7  ;;  %v1108_v23 = vld [vmem:[#allocation2 + $0x48] sm:$0xff]  ;;  %v1115_v24 = vpack.c.bf16 %v1100_v21, %v1099_v20  ;;  %v1109_v28 = vld [vmem:[#allocation2 + $0x50] sm:$0xff]  ;;  %v1110_v29 = vld [vmem:[#allocation2 + $0x58] sm:$0xff]  ;;  %v1116_v30 = vpack.c.bf16 %v1102_v27, %v1101_v26  ;;  %v1143_v46 = vsub.s32 0, %v1142_v45  ;;  %v1147_v48 = vsub.s32 1, %v1142_v45  ;;  %s3021_s5 = sld [smem:[#allocation29_spill]] }
 0x1fd   : > { %1235 = vmatprep.subr.bf16.mxu0 %v2092_v8  ;;  %1776 = vmatprep.subr.bf16.mxu1 %v2092_v8  ;;  %v1119_v25 = vpack.c.bf16 %v1108_v23, %v1107_v22  ;;  %v1120_v31 = vpack.c.bf16 %v1110_v29, %v1109_v28  ;;  %v1103_v32 = vld [vmem:[#allocation2 + $0x20] sm:$0xff]  ;;  %v1104_v33 = vld [vmem:[#allocation2 + $0x28] sm:$0xff]  ;;  %v1105_v38 = vld [vmem:[#allocation2 + $0x30] sm:$0xff]  ;;  %s2878_s28 = scalar_lea.sflag [#allocation5], %s321_s9  ;;  %s2198_s26 = scalar_lea.vmem %s2866_s12, 4096 }
 0x1fe   : > { %v1111_v34 = vld [vmem:[#allocation2 + $0x60] sm:$0xff]  ;;  %v1112_v35 = vld [vmem:[#allocation2 + $0x68] sm:$0xff]  ;;  %v1117_v36 = vpack.c.bf16 %v1104_v33, %v1103_v32  ;;  %v1106_v39 = vld [vmem:[#allocation2 + $0x38] sm:$0xff]  ;;  %p2199_p11 = scmp.ne.s32.totalorder %s2866_s12, %s2198_s26  ;;  %p3022_p9 = scmp.ne.s32.totalorder %s3001_s21, 0 }
 0x1ff   : > { %v1121_v37 = vpack.c.bf16 %v1112_v35, %v1111_v34  ;;  %v1113_v40 = vld [vmem:[#allocation2 + $0x70] sm:$0xff]  ;;  %v1114_v41 = vld [vmem:[#allocation2 + $0x78] sm:$0xff]  ;;  %v1118_v42 = vpack.c.bf16 %v1106_v39, %v1105_v38  ;;  %v1139_v47 = vld [vmem:[%s329_s2] sm:$0x3]  ;;  %s2364_s17 = smov [#allocation9]  }
 0x200   : > { %1236 = vmatpush1.bf16.msra.mxu0 %v2094_v9  ;;  %1784 = vmatpush1.bf16.msra.mxu1 %v2094_v9  ;;  %v1122_v43 = vpack.c.bf16 %v1114_v41, %v1113_v40  ;;  %v2798_v49 = vrot.slane %v1139_v47, %v1143_v46  ;;  %v2800_v50 = vrot.slane %v1139_v47, %v1147_v48  ;;  %p2200_p10 = pnand %p2199_p11, %p3022_p9  ;;  %s2202_s2 = sshll.u32 %s2364_s17, 4  ;;  %s2203_s2 = int_to_ptr.vmem [resolvable:$false] %s2202_s2 }
 0x201   : > { %1237 = vmatprep.subr.bf16.mxu0 %v2095_v10  ;;  %1777 = vmatprep.subr.bf16.mxu1 %v2095_v10  ;;  %s1645_s30 = sshll.u32 %s3020_s8, 6  ;;  %s2204_s7 = scalar_lea.vmem %s2203_s2, 8192 }
 0x202   : > { %s1390_s23 = sadd.s32 %s1645_s30, %s2701_s15  ;;  %p2201_p6 = pneg %p2200_p10 }
 0x203   : > { %s1639_s29 = sshll.u32 %s1390_s23, 7  ;;  %p2205_p1 = scmp.lt.s32.totalorder %s2866_s12, %s2203_s2 }
 0x204   : > { %1238 = vmatpush1.bf16.msra.mxu0 %v2097_v11  ;;  %1785 = vmatpush1.bf16.msra.mxu1 %v2097_v11  ;;  %s2860_s0 = scalar_lea.hbm %s3021_s5, %s1639_s29  ;;  %p2206_p4 = scmp.lt.s32.totalorder %s2204_s7, %s2198_s26 }
 0x205   : > { %1239 = vmatprep.subr.bf16.mxu0 %v2098_v12  ;;  %1778 = vmatprep.subr.bf16.mxu1 %v2098_v12 }
 0x206   : > { %p2207_p12 = por %p2206_p4, %p2205_p1 }
 0x208   : > { %1240 = vmatpush1.bf16.msra.mxu0 %v2100_v13  ;;  %1786 = vmatpush1.bf16.msra.mxu1 %v2100_v13  ;;  %p2208_p8 = pnand %p2207_p12, %p2201_p6 }
 0x209   : > { %1241 = vmatprep.subr.bf16.mxu0 %v2101_v14  ;;  %1779 = vmatprep.subr.bf16.mxu1 %v2101_v14 }
 0x20c   : > { %1242 = vmatpush1.bf16.msra.mxu0 %v2103_v15  ;;  %1787 = vmatpush1.bf16.msra.mxu1 %v2103_v15 }
 0x20d   : > { %1243 = vmatprep.subr.bf16.mxu0 %v2104_v16  ;;  %1780 = vmatprep.subr.bf16.mxu1 %v2104_v16 }
 0x210   : > { %1244 = vmatpush1.bf16.msra.mxu0 %v2106_v17  ;;  %1788 = vmatpush1.bf16.msra.mxu1 %v2106_v17 }
 0x211   : > { %1245 = vmatprep.subr.bf16.mxu0 %v2107_v18  ;;  %1781 = vmatprep.subr.bf16.mxu1 %v2107_v18 }
 0x214   : > { %1246 = vmatpush1.bf16.msra.mxu0 %v2109_v19  ;;  %1789 = vmatpush1.bf16.msra.mxu1 %v2109_v19 }
 0x217   : > { %1264 = vmatmul.mubr.bf16.vlgmr.msra.gmra.mrb[0].mxu0 %v1115_v24  ;;  %1304 = vmatmul.mubr.bf16.vlgmr.msra.gmra.mrb[0].mxu1 %v1119_v25 }
 0x218   : > { %1273 = vmatprep.mubr.bf16.mxu0 %v2363_v5  ;;  %1313 = vmatprep.mubr.bf16.mxu1 %v2363_v5 }
 0x21f   : > { %1274 = vmatmul.mubr.bf16.gmra.mrb[4].mxu0 %v1116_v30  ;;  %1314 = vmatmul.mubr.bf16.gmra.mrb[4].mxu1 %v1120_v31 }
 0x220   : > { %1283 = vmatprep.mubr.bf16.mxu0 %v2363_v5  ;;  %1323 = vmatprep.mubr.bf16.mxu1 %v2363_v5 }
 0x227   : > { %1284 = vmatmul.mubr.bf16.gmra.mrb[8].mxu0 %v1117_v36  ;;  %1324 = vmatmul.mubr.bf16.gmra.mrb[8].mxu1 %v1121_v37 }
 0x228   : > { %1293 = vmatprep.mubr.bf16.mxu0 %v2363_v5  ;;  %1333 = vmatprep.mubr.bf16.mxu1 %v2363_v5 }
 0x22f   : > { %1294 = vmatmul.mubr.bf16.gmra.mrb[12].mxu0 %v1118_v42  ;;  %1334 = vmatmul.mubr.bf16.gmra.mrb[12].mxu1 %v1122_v43 }
 0x2ea   : > { %v1265_v51 = vpop.f32.mrb[0].mxu0  ;;  %v1305_v52 = vpop.f32.mrb[0].mxu1 }
 0x2eb   : > { %v1266_v53 = vadd.f32 %v1265_v51, %v2798_v49  ;;  %v1306_v54 = vadd.f32 %v1305_v52, %v2798_v49  ;;  %v1267_v55 = vpop.f32.mrb[1].mxu0  ;;  %v1307_v56 = vpop.f32.mrb[1].mxu1 }
 0x2ec   : > { %v1268_v57 = vadd.f32 %v1267_v55, %v2800_v50  ;;  %v1308_v2 = vadd.f32 %v1307_v56, %v2800_v50  ;;  %v1269_v58 = vpop.f32.mrb[2].mxu0  ;;  %v1309_v59 = vpop.f32.mrb[2].mxu1 }
 0x2ed   : > { %1344 = vst [vmem:[%s2713_s24] sm:$0xff] %v1266_v53  ;;  %1360 = vst [vmem:[%s2713_s24 + $0x80] sm:$0xff] %v1306_v54  ;;  %v1270_v60 = vadd.f32 %v1269_v58, %v2798_v49  ;;  %v1310_v61 = vadd.f32 %v1309_v59, %v2798_v49  ;;  %v1271_v62 = vpop.f32.mrb[3].mxu0  ;;  %v1311_v63 = vpop.f32.mrb[3].mxu1 }
 0x2ee   : > { %1345 = vst [vmem:[%s2713_s24 + $0x8] sm:$0xff] %v1268_v57  ;;  %1361 = vst [vmem:[%s2713_s24 + $0x88] sm:$0xff] %v1308_v2  ;;  %v1272_v0 = vadd.f32 %v1271_v62, %v2800_v50  ;;  %v1312_v1 = vadd.f32 %v1311_v63, %v2800_v50 }
 0x2ef   : > { %1346 = vst [vmem:[%s2713_s24 + $0x10] sm:$0xff] %v1270_v60  ;;  %1362 = vst [vmem:[%s2713_s24 + $0x90] sm:$0xff] %v1310_v61 }
 0x2f0   : > { %1347 = vst [vmem:[%s2713_s24 + $0x18] sm:$0xff] %v1272_v0  ;;  %1363 = vst [vmem:[%s2713_s24 + $0x98] sm:$0xff] %v1312_v1 }
 0x2f2   : > { %v1275_v3 = vpop.f32.mrb[4].mxu0  ;;  %v1315_v4 = vpop.f32.mrb[4].mxu1 }
 0x2f3   : > { %v1276_v5 = vadd.f32 %v1275_v3, %v2798_v49  ;;  %v1316_v6 = vadd.f32 %v1315_v4, %v2798_v49  ;;  %v1277_v7 = vpop.f32.mrb[5].mxu0  ;;  %v1317_v8 = vpop.f32.mrb[5].mxu1 }
 0x2f4   : > { %v1278_v9 = vadd.f32 %v1277_v7, %v2800_v50  ;;  %v1318_v10 = vadd.f32 %v1317_v8, %v2800_v50  ;;  %v1279_v11 = vpop.f32.mrb[6].mxu0  ;;  %v1319_v12 = vpop.f32.mrb[6].mxu1 }
 0x2f5   : > { %1348 = vst [vmem:[%s2713_s24 + $0x20] sm:$0xff] %v1276_v5  ;;  %1364 = vst [vmem:[%s2713_s24 + $0xa0] sm:$0xff] %v1316_v6  ;;  %v1280_v13 = vadd.f32 %v1279_v11, %v2798_v49  ;;  %v1320_v14 = vadd.f32 %v1319_v12, %v2798_v49  ;;  %v1281_v15 = vpop.f32.mrb[7].mxu0  ;;  %v1321_v16 = vpop.f32.mrb[7].mxu1 }
 0x2f6   : > { %1349 = vst [vmem:[%s2713_s24 + $0x28] sm:$0xff] %v1278_v9  ;;  %1365 = vst [vmem:[%s2713_s24 + $0xa8] sm:$0xff] %v1318_v10  ;;  %v1282_v17 = vadd.f32 %v1281_v15, %v2800_v50  ;;  %v1322_v18 = vadd.f32 %v1321_v16, %v2800_v50 }
 0x2f7   : > { %1350 = vst [vmem:[%s2713_s24 + $0x30] sm:$0xff] %v1280_v13  ;;  %1366 = vst [vmem:[%s2713_s24 + $0xb0] sm:$0xff] %v1320_v14 }
 0x2f8   : > { %1351 = vst [vmem:[%s2713_s24 + $0x38] sm:$0xff] %v1282_v17  ;;  %1367 = vst [vmem:[%s2713_s24 + $0xb8] sm:$0xff] %v1322_v18 }
 0x2fa   : > { %v1285_v19 = vpop.f32.mrb[8].mxu0  ;;  %v1325_v20 = vpop.f32.mrb[8].mxu1 }
 0x2fb   : > { %v1286_v21 = vadd.f32 %v1285_v19, %v2798_v49  ;;  %v1326_v22 = vadd.f32 %v1325_v20, %v2798_v49  ;;  %v1287_v23 = vpop.f32.mrb[9].mxu0  ;;  %v1327_v24 = vpop.f32.mrb[9].mxu1 }
 0x2fc   : > { %v1288_v25 = vadd.f32 %v1287_v23, %v2800_v50  ;;  %v1328_v26 = vadd.f32 %v1327_v24, %v2800_v50  ;;  %v1289_v27 = vpop.f32.mrb[10].mxu0  ;;  %v1329_v28 = vpop.f32.mrb[10].mxu1 }
 0x2fd   : > { %1352 = vst [vmem:[%s2713_s24 + $0x40] sm:$0xff] %v1286_v21  ;;  %1368 = vst [vmem:[%s2713_s24 + $0xc0] sm:$0xff] %v1326_v22  ;;  %v1290_v29 = vadd.f32 %v1289_v27, %v2798_v49  ;;  %v1330_v30 = vadd.f32 %v1329_v28, %v2798_v49  ;;  %v1291_v31 = vpop.f32.mrb[11].mxu0  ;;  %v1331_v32 = vpop.f32.mrb[11].mxu1 }
 0x2fe   : > { %1353 = vst [vmem:[%s2713_s24 + $0x48] sm:$0xff] %v1288_v25  ;;  %1369 = vst [vmem:[%s2713_s24 + $0xc8] sm:$0xff] %v1328_v26  ;;  %v1292_v33 = vadd.f32 %v1291_v31, %v2800_v50  ;;  %v1332_v34 = vadd.f32 %v1331_v32, %v2800_v50 }
 0x2ff   : > { %1354 = vst [vmem:[%s2713_s24 + $0x50] sm:$0xff] %v1290_v29  ;;  %1370 = vst [vmem:[%s2713_s24 + $0xd0] sm:$0xff] %v1330_v30 }
 0x300   : > { %1355 = vst [vmem:[%s2713_s24 + $0x58] sm:$0xff] %v1292_v33  ;;  %1371 = vst [vmem:[%s2713_s24 + $0xd8] sm:$0xff] %v1332_v34 }
 0x302   : > { %v1295_v35 = vpop.f32.mrb[12].mxu0  ;;  %v1335_v36 = vpop.f32.mrb[12].mxu1 }
 0x303   : > { %v1296_v37 = vadd.f32 %v1295_v35, %v2798_v49  ;;  %v1336_v38 = vadd.f32 %v1335_v36, %v2798_v49  ;;  %v1297_v39 = vpop.f32.mrb[13].mxu0  ;;  %v1337_v40 = vpop.f32.mrb[13].mxu1 }
 0x304   : > { %v1298_v41 = vadd.f32 %v1297_v39, %v2800_v50  ;;  %v1338_v42 = vadd.f32 %v1337_v40, %v2800_v50  ;;  %v1299_v43 = vpop.f32.mrb[14].mxu0  ;;  %v1339_v44 = vpop.f32.mrb[14].mxu1 }
 0x305   : > { %1356 = vst [vmem:[%s2713_s24 + $0x60] sm:$0xff] %v1296_v37  ;;  %1372 = vst [vmem:[%s2713_s24 + $0xe0] sm:$0xff] %v1336_v38  ;;  %v1300_v45 = vadd.f32 %v1299_v43, %v2798_v49  ;;  %v1340_v46 = vadd.f32 %v1339_v44, %v2798_v49  ;;  %v1301_v47 = vpop.f32.mrb[15].mxu0  ;;  %v1341_v48 = vpop.f32.mrb[15].mxu1 }
 0x306   : > { %1357 = vst [vmem:[%s2713_s24 + $0x68] sm:$0xff] %v1298_v41  ;;  %1373 = vst [vmem:[%s2713_s24 + $0xe8] sm:$0xff] %v1338_v42  ;;  %v1302_v51 = vadd.f32 %v1301_v47, %v2800_v50  ;;  %v1342_v52 = vadd.f32 %v1341_v48, %v2800_v50 }
 0x307   : > { %1358 = vst [vmem:[%s2713_s24 + $0x70] sm:$0xff] %v1300_v45  ;;  %1374 = vst [vmem:[%s2713_s24 + $0xf0] sm:$0xff] %v1340_v46 }
 0x308   : > { %1359 = vst [vmem:[%s2713_s24 + $0x78] sm:$0xff] %v1302_v51  ;;  %1375 = vst [vmem:[%s2713_s24 + $0xf8] sm:$0xff] %v1342_v52 }
 0x309   : > { %2211 = shalt.err (!%p2208_p8)
}
 0x30a   : > { %s2212_s9 = scalar_lea.hbm %s2860_s0, 4096  ;;  %s2216_s27 = scalar_lea.hbm %s3021_s5, 16384 }
 0x30b   : > { %p2213_p2 = scmp.ne.s32.totalorder %s2860_s0, %s2212_s9  ;;  %p2217_p7 = scmp.lt.u32.totalorder %s2860_s0, %s3021_s5 }
 0x30c   : > { %p2218_p5 = scmp.lt.u32.totalorder %s2216_s27, %s2212_s9  ;;  %p2220_p11 = scmp.lt.u32.totalorder %s2212_s9, %s2860_s0 }
 0x30d   : > { %p2214_p0 = pnand %p2213_p2, %p3022_p9 }
 0x30e   : > { %p2219_p3 = por %p2218_p5, %p2217_p7 }
 0x30f   : > { %p2215_p13 = pneg %p2214_p0 }
 0x310   : > { %p2221_p10 = por %p2220_p11, %p2219_p3 }
 0x312   : > { %p2222_p6 = pnand %p2221_p10, %p2215_p13 }
 0x314   : > { %2225 = shalt.err (!%p2222_p6)
}
 0x315   : > { %s2365_s4 = smov 256   ;;  %s2366_s8 = smov 512  }
 0x316   : > { %s2367_s30 = smov 16  }
 0x317   : > { %1798 = dma.vmem_to_hbm [thread:$0]  (%p3022_p9), %s2866_s12, 4096, %s2860_s0, %s2878_s28, %s2365_s4, %s2366_s8, %s2367_s30  }
 0x318 PF: > { %p1818_p1 = scmp.ge.s32.totalorder %s2352_s6, 2  ;;  %s1408_s23 = sand.u32 1, %s2300_s18  }
 0x319   : > { %p3023_p4 = scmp.ne.s32.totalorder %s3002_s11, 0  ;;  %s1409_s29 = scalar_lea.sflag [#allocation5], %s1408_s23 }
 0x31b   : > { %p1812_p12 = pnand %p1818_p1, %p3023_p4 }
 0x31d   : > { %2295 = dma.done.wait (!%p1812_p12), %s1409_s29, 4096  }
 0x31e   : > { %2297 = vsyncadd (!%p1812_p12), %s1409_s29, 4294963200  ;;  %s22_s6 = sadd.s32 1, %s2352_s6   ;;  %s3025_s21 = sld [smem:[#allocation23_spill]] }
 0x31f   : > { %p2907_p8 = scmp.ge.s32.totalorder %s22_s6, 6   ;;  %s3026_s12 = sld [smem:[#allocation14_spill]] }
 0x320   : > { %s3027_s23 = sld [smem:[#allocation24_spill]]  ;;  %s3028_s15 = sld [smem:[#allocation15_spill]] }
 0x321   : > { %s3029_s26 = sld [smem:[#allocation22_spill]]  ;;  %s3030_s27 = sld [smem:[#allocation18_spill]] }
 0x322   : > { %s3031_s28 = sld [smem:[#allocation19_spill]]  ;;  %s3032_s29 = sld [smem:[#allocation20_spill]] }
 0x323   : > { %s3033_s30 = sld [smem:[#allocation21_spill]]  ;;  %s3034_s18 = smov %s2304_s19 }
 0x324   : > { %s3035_s19 = smov %s2308_s20  ;;  %s3036_s20 = smov %s3025_s21 }
 0x325   : > { %s3037_s21 = smov %s2316_s22  ;;  %s3038_s22 = smov %s3026_s12 }
 0x326   : > { %s3039_s24 = smov %s2328_s25  ;;  %s3040_s25 = smov %s3028_s15 }
 0x327   :  { %21 = sbr.rel (!%p2907_p8) target bundleno = 17 (0x11), region = 107 }
 0x32e   :  { %1414 = vsyncpa [#allocation4], 1 }
 0x32f   :  { %1416 = vsyncpa [#allocation4 + $0x1], 1 }
 0x330   :  { %1417 = vsyncpa [#allocation7], 1 }
 0x331   :  { %1418 = vsyncpa [#allocation5], 1 }
 0x332   :  { %1420 = vsyncpa [#allocation5 + $0x1], 1 }

</bundles_post_ra>
